<compile_context>
chip_gen: v5e
topology: v5e:2x2
jax: 0.10.0
libtpu: 0.0.40
codegen_flags: <defaults>
</compile_context>

<pallas_src>
import functools

import jax
import jax.numpy as jnp
from jax.experimental import pallas as pl
from jax.experimental.pallas import tpu as pltpu

_LANE = 128
_SUBLANE = 8


def _round_up(n, m):
    return (n + m - 1) // m * m


def _cdiv(a, b):
    return (a + b - 1) // b


def _resident(shape):
    """VMEM-resident operand: constant index_map => fetched once, never again.

    Request single buffering (pl.Buffered(1)) so constant weights/centers
    don't burn a dead second pipeline buffer; fall back gracefully if the
    installed JAX doesn't accept pipeline_mode.
    """
    idx = lambda *_: (0,) * len(shape)
    try:
        return pl.BlockSpec(shape, idx, pipeline_mode=pl.Buffered(1))
    except (TypeError, AttributeError):
        return pl.BlockSpec(shape, idx)


def _rbf_mlp_kernel(x_ref, ctg_ref, c2g_ref, w1_ref, b1_ref, w2_ref, b2_ref,
                    w3_ref, b3_ref, o_ref, *, gamma, rbf_type):
    x = x_ref[...]                                      # (tb, F)   f32, F unpadded

    # gamma * ||x - c||^2 on the MXU:
    #   t = gamma*||x||^2 + gamma*||c||^2 - x @ (2*gamma*c^T), clamped at 0.
    # ctg_ref / c2g_ref already carry the gamma / 2*gamma scaling (wrapper-folded).
    x2 = jnp.sum(x * x, axis=-1, keepdims=True)         # (tb, 1)
    xc = jnp.dot(x, ctg_ref[...],
                 preferred_element_type=jnp.float32)    # (tb, K_p)  MXU
    t = jnp.maximum(gamma * x2 + c2g_ref[...] - xc, 0.0)

    if rbf_type == "gaussian":
        phi = jnp.exp(-t)
    elif rbf_type == "multiquadric":
        phi = jnp.sqrt(1.0 + t)
    else:  # inverse_multiquadric: single EUP rsqrt instead of sqrt + divide
        phi = jax.lax.rsqrt(1.0 + t)

    # MLP head: cast activations to the weight dtype (bf16 by default) at the
    # dot only; accumulation, bias-add and ReLU stay f32 on the VPU.
    # TODO(synk): nn.Dropout is identity at inference time; not modeled here.
    # TODO(synk): only the module default activation="relu" is implemented.
    mm_dtype = w1_ref.dtype
    h1 = jnp.maximum(
        jnp.dot(phi.astype(mm_dtype), w1_ref[...],
                preferred_element_type=jnp.float32) + b1_ref[...], 0.0)
    h2 = jnp.maximum(
        jnp.dot(h1.astype(mm_dtype), w2_ref[...],
                preferred_element_type=jnp.float32) + b2_ref[...], 0.0)
    out = jnp.dot(h2.astype(mm_dtype), w3_ref[...],
                  preferred_element_type=jnp.float32) + b3_ref[...]

    o_ref[...] = out.astype(o_ref.dtype)


def prepare_rbf_network(centers, params, *, gamma=1.0, use_bf16=True):
    """One-time constant preprocessing (call once, reuse across forwards).

    centers: (hidden_size, input_size) f32.
    params:  ((w1,b1),(w2,b2),(w3,b3)) with (in, out)-layout weights.
    Returns a tuple of device arrays consumed by rbf_network_forward.
    """
    (w1, b1), (w2, b2), (w3, b3) = params
    K, F = centers.shape
    H1, H2, OUT = w1.shape[1], w2.shape[1], w3.shape[1]
    K_p, H1_p, H2_p = (_round_up(d, _LANE) for d in (K, H1, H2))

    f32 = jnp.float32
    mm_dtype = jnp.bfloat16 if use_bf16 else jnp.float32
    gamma = float(gamma)

    def pad2(a, rows, cols):
        a = jnp.asarray(a, f32)
        return jnp.pad(a, ((0, rows - a.shape[0]), (0, cols - a.shape[1])))

    # Zero-padding keeps the math exact: fake centers' phi columns hit zero W1
    # rows; padded hidden cols get zero bias -> relu(0)=0 -> zero rows
    # downstream; the output dim is left unpadded.
    c_p = pad2(centers, K_p, F)                               # (K_p, F)
    ct_g = (2.0 * gamma) * jnp.transpose(c_p)                 # (F, K_p) = 2*gamma*c^T
    c2_g = gamma * jnp.sum(c_p * c_p, axis=-1).reshape(1, K_p)

    w1_p = pad2(w1, K_p, H1_p).astype(mm_dtype)
    w2_p = pad2(w2, H1_p, H2_p).astype(mm_dtype)
    w3_p = pad2(w3, H2_p, OUT).astype(mm_dtype)               # narrow OUT kept
    b1_p = jnp.pad(jnp.asarray(b1, f32), (0, H1_p - H1)).reshape(1, H1_p)
    b2_p = jnp.pad(jnp.asarray(b2, f32), (0, H2_p - H2)).reshape(1, H2_p)
    b3_p = jnp.asarray(b3, f32).reshape(1, OUT)

    return (ct_g, c2_g, w1_p, b1_p, w2_p, b2_p, w3_p, b3_p)


def rbf_network_forward(x, consts, *, gamma=1.0, rbf_type="gaussian",
                        tile_b=2048):
    """x: (B, input_size) f32.  consts: output of prepare_rbf_network
    (gamma must match the value used there)."""
    ct_g, c2_g, w1_p, b1_p, w2_p, b2_p, w3_p, b3_p = consts
    B, F = x.shape
    assert ct_g.shape[0] == F, (ct_g.shape, F)
    K_p = ct_g.shape[1]
    H1_p = w1_p.shape[1]
    H2_p = w2_p.shape[1]
    OUT = w3_p.shape[1]

    # Batch tiling:
    #  - cap tiles at tile_b rows (per-step VMEM for the (tb,128) f32
    #    intermediates stays well inside even v5e's 16 MiB scoped default);
    #  - once B is large enough that each step still has >=512 rows, force
    #    >=4 grid steps so the "parallel" axis actually splits across v7x's
    #    two TensorCores (per-step overhead ~0.35 us is negligible then);
    #  - tb is a sublane multiple and only a small batch tail gets zero-padded.
    n_tiles = max(_cdiv(B, int(tile_b)), 1)
    n_tiles = max(n_tiles, min(4, _cdiv(B, 512)))
    tb = _round_up(_cdiv(B, n_tiles), _SUBLANE)
    B_p = n_tiles * tb

    x_p = jnp.asarray(x, jnp.float32)
    if B_p != B:
        # Zero rows stay finite through the RBF (d2 = ||c||^2) and are sliced off.
        x_p = jnp.pad(x_p, ((0, B_p - B), (0, 0)))

    kernel = functools.partial(_rbf_mlp_kernel, gamma=float(gamma),
                               rbf_type=rbf_type.lower())

    out = pl.pallas_call(
        kernel,
        out_shape=jax.ShapeDtypeStruct((B_p, OUT), jnp.float32),
        grid_spec=pltpu.PrefetchScalarGridSpec(
            num_scalar_prefetch=0,
            grid=(n_tiles,),
            in_specs=[
                # x tile: pipelined / double-buffered; true (unpadded) feature width.
                pl.BlockSpec((tb, F), lambda i: (i, 0)),
                _resident((F, K_p)),                          # 2*gamma * centers^T
                _resident((1, K_p)),                          # gamma * ||c||^2
                _resident((K_p, H1_p)), _resident((1, H1_p)),  # W1, b1
                _resident((H1_p, H2_p)), _resident((1, H2_p)),  # W2, b2
                _resident((H2_p, OUT)), _resident((1, OUT)),    # W3, b3 (narrow OUT)
            ],
            out_specs=pl.BlockSpec((tb, OUT), lambda i: (i, 0)),
        ),
        compiler_params=pltpu.CompilerParams(
            dimension_semantics=("parallel",)),   # batch tiles shard on v7x's 2 TCs
    )(x_p, ct_g, c2_g, w1_p, b1_p, w2_p, b2_p, w3_p, b3_p)

    return out if B_p == B else out[:B]


if __name__ == "__main__":
    # Module hyperparameters (mode="ar" -> final Linear(prev, 1)).
    input_size, hidden_size = 8, 32
    hidden_layers = [64, 32]
    gamma = 1.0
    rbf_type = "gaussian"
    B = 8

    key = jax.random.PRNGKey(0)
    k1, k2, k3, k4, k5, k6, kx = jax.random.split(key, 7)

    # Default centers: linspace(-1, 1, hidden_size) repeated across input features.
    centers = jnp.tile(
        jnp.linspace(-1.0, 1.0, hidden_size).reshape(-1, 1),
        (1, input_size)).astype(jnp.float32)                     # (hidden, input)

    def init_linear(kw, kb, fan_in, fan_out):
        bound = 1.0 / jnp.sqrt(jnp.float32(fan_in))
        w = jax.random.uniform(kw, (fan_in, fan_out), jnp.float32, -bound, bound)
        b = jax.random.uniform(kb, (fan_out,), jnp.float32, -bound, bound)
        return w, b

    w1, b1 = init_linear(k1, k2, hidden_size, hidden_layers[0])       # (32, 64)
    w2, b2 = init_linear(k3, k4, hidden_layers[0], hidden_layers[1])  # (64, 32)
    w3, b3 = init_linear(k5, k6, hidden_layers[1], 1)                 # (32, 1)  mode="ar"
    params = ((w1, b1), (w2, b2), (w3, b3))

    x = jax.random.normal(kx, (B, input_size), jnp.float32)

    # Plain-JAX reference (module semantics, f32 throughout).
    d2 = jnp.sum((x[:, None, :] - centers[None, :, :]) ** 2, axis=-1)
    phi = jnp.exp(-gamma * d2)
    h1 = jnp.maximum(phi @ w1 + b1, 0.0)
    h2 = jnp.maximum(h1 @ w2 + b2, 0.0)
    ref = h2 @ w3 + b3

    # Exactness check: f32 matmul path must match the reference tightly
    # (proves padding / gamma-folded distance rewrite plumbing is exact).
    consts_f32 = prepare_rbf_network(centers, params, gamma=gamma, use_bf16=False)
    out_f32 = rbf_network_forward(x, consts_f32, gamma=gamma, rbf_type=rbf_type)
    out_f32 = jax.block_until_ready(out_f32)
    assert out_f32.shape == (B, 1), out_f32.shape
    assert jnp.allclose(out_f32, ref, atol=2e-5, rtol=2e-5), \
        jnp.max(jnp.abs(out_f32 - ref))

    # Default (fast) path: bf16 MXU operands with f32 accumulation; allow
    # bf16 rounding in the comparison.
    consts_bf16 = prepare_rbf_network(centers, params, gamma=gamma, use_bf16=True)
    out_bf16 = rbf_network_forward(x, consts_bf16, gamma=gamma, rbf_type=rbf_type)
    out_bf16 = jax.block_until_ready(out_bf16)
    assert out_bf16.shape == (B, 1), out_bf16.shape
    assert jnp.allclose(out_bf16, ref, atol=5e-2, rtol=5e-2), \
        jnp.max(jnp.abs(out_bf16 - ref))

    print("KERNEL_OK")
</pallas_src>

<mosaic_0001>
module attributes {stable_mosaic.version = 11 : i64} {
  func.func @_rbf_mlp_kernel(%arg0: i32, %arg1: memref<8x8xf32, #tpu.memory_space<vmem>>, %arg2: memref<8x128xf32, #tpu.memory_space<vmem>>, %arg3: memref<1x128xf32, #tpu.memory_space<vmem>>, %arg4: memref<128x128xf32, #tpu.memory_space<vmem>>, %arg5: memref<1x128xf32, #tpu.memory_space<vmem>>, %arg6: memref<128x128xf32, #tpu.memory_space<vmem>>, %arg7: memref<1x128xf32, #tpu.memory_space<vmem>>, %arg8: memref<128x1xf32, #tpu.memory_space<vmem>>, %arg9: memref<1x1xf32, #tpu.memory_space<vmem>>, %arg10: memref<8x1xf32, #tpu.memory_space<vmem>>) attributes {dimension_semantics = [#tpu.dimension_semantics<parallel>], iteration_bounds = array<i64: 1>, scalar_prefetch = 0 : i64, scratch_operands = 0 : i64, tpu.core_type = #tpu.core_type<tc>, window_params = [{transform_indices = @transform_0, window_bounds = array<i64: 8, 8>}, {pipeline_mode = #tpu.pipeline_mode<synchronous>, transform_indices = @transform_1, window_bounds = array<i64: 8, 128>}, {pipeline_mode = #tpu.pipeline_mode<synchronous>, transform_indices = @transform_2, window_bounds = array<i64: 1, 128>}, {pipeline_mode = #tpu.pipeline_mode<synchronous>, transform_indices = @transform_3, window_bounds = array<i64: 128, 128>}, {pipeline_mode = #tpu.pipeline_mode<synchronous>, transform_indices = @transform_4, window_bounds = array<i64: 1, 128>}, {pipeline_mode = #tpu.pipeline_mode<synchronous>, transform_indices = @transform_5, window_bounds = array<i64: 128, 128>}, {pipeline_mode = #tpu.pipeline_mode<synchronous>, transform_indices = @transform_6, window_bounds = array<i64: 1, 128>}, {pipeline_mode = #tpu.pipeline_mode<synchronous>, transform_indices = @transform_7, window_bounds = array<i64: 128, 1>}, {pipeline_mode = #tpu.pipeline_mode<synchronous>, transform_indices = @transform_8, window_bounds = array<i64: 1, 1>}, {transform_indices = @transform_9, window_bounds = array<i64: 8, 1>}]} {
    %c0 = arith.constant 0 : index
    %c0_0 = arith.constant 0 : index
    %0 = vector.load %arg1[%c0, %c0_0] : memref<8x8xf32, #tpu.memory_space<vmem>>, vector<8x8xf32>
    %1 = arith.mulf %0, %0 : vector<8x8xf32>
    %cst = arith.constant dense<0.000000e+00> : vector<8xf32>
    %2 = vector.multi_reduction <add>, %1, %cst [1] : vector<8x8xf32> to vector<8xf32>
    %3 = vector.shape_cast %2 : vector<8xf32> to vector<8x1xf32>
    %c0_1 = arith.constant 0 : index
    %c0_2 = arith.constant 0 : index
    %4 = vector.load %arg2[%c0_1, %c0_2] : memref<8x128xf32, #tpu.memory_space<vmem>>, vector<8x128xf32>
    %cst_3 = arith.constant dense<0.000000e+00> : vector<8x128xf32>
    %5 = tpu.matmul %0, %4, %cst_3 {dimension_numbers = #tpu.dot_dimension_numbers<[1], [0], [0], [1], [0, 0, 1, 1], [], []>} : vector<8x8xf32>, vector<8x128xf32>, vector<8x128xf32> -> vector<8x128xf32>
    %cst_4 = arith.constant 1.000000e+00 : f32
    %6 = vector.broadcast %cst_4 : f32 to vector<8x1xf32>
    %7 = arith.mulf %6, %3 : vector<8x1xf32>
    %c0_5 = arith.constant 0 : index
    %c0_6 = arith.constant 0 : index
    %8 = vector.load %arg3[%c0_5, %c0_6] : memref<1x128xf32, #tpu.memory_space<vmem>>, vector<1x128xf32>
    %9 = vector.broadcast %7 : vector<8x1xf32> to vector<8x128xf32>
    %10 = vector.broadcast %8 : vector<1x128xf32> to vector<8x128xf32>
    %11 = arith.addf %9, %10 : vector<8x128xf32>
    %12 = arith.subf %11, %5 : vector<8x128xf32>
    %cst_7 = arith.constant 0.000000e+00 : f32
    %13 = vector.broadcast %cst_7 : f32 to vector<8x128xf32>
    %14 = arith.maximumf %12, %13 : vector<8x128xf32>
    %cst_8 = arith.constant 0.000000e+00 : f32
    %15 = vector.broadcast %cst_8 : f32 to vector<8x128xf32>
    %16 = arith.subf %15, %14 : vector<8x128xf32>
    %17 = math.exp %16 : vector<8x128xf32>
    %c0_9 = arith.constant 0 : index
    %c0_10 = arith.constant 0 : index
    %18 = vector.load %arg4[%c0_9, %c0_10] : memref<128x128xf32, #tpu.memory_space<vmem>>, vector<128x128xf32>
    %cst_11 = arith.constant dense<0.000000e+00> : vector<8x128xf32>
    %19 = tpu.matmul %17, %18, %cst_11 {dimension_numbers = #tpu.dot_dimension_numbers<[1], [0], [0], [1], [0, 0, 1, 1], [], []>} : vector<8x128xf32>, vector<128x128xf32>, vector<8x128xf32> -> vector<8x128xf32>
    %c0_12 = arith.constant 0 : index
    %c0_13 = arith.constant 0 : index
    %20 = vector.load %arg5[%c0_12, %c0_13] : memref<1x128xf32, #tpu.memory_space<vmem>>, vector<1x128xf32>
    %21 = vector.broadcast %20 : vector<1x128xf32> to vector<8x128xf32>
    %22 = arith.addf %19, %21 : vector<8x128xf32>
    %cst_14 = arith.constant 0.000000e+00 : f32
    %23 = vector.broadcast %cst_14 : f32 to vector<8x128xf32>
    %24 = arith.maximumf %22, %23 : vector<8x128xf32>
    %c0_15 = arith.constant 0 : index
    %c0_16 = arith.constant 0 : index
    %25 = vector.load %arg6[%c0_15, %c0_16] : memref<128x128xf32, #tpu.memory_space<vmem>>, vector<128x128xf32>
    %cst_17 = arith.constant dense<0.000000e+00> : vector<8x128xf32>
    %26 = tpu.matmul %24, %25, %cst_17 {dimension_numbers = #tpu.dot_dimension_numbers<[1], [0], [0], [1], [0, 0, 1, 1], [], []>} : vector<8x128xf32>, vector<128x128xf32>, vector<8x128xf32> -> vector<8x128xf32>
    %c0_18 = arith.constant 0 : index
    %c0_19 = arith.constant 0 : index
    %27 = vector.load %arg7[%c0_18, %c0_19] : memref<1x128xf32, #tpu.memory_space<vmem>>, vector<1x128xf32>
    %28 = vector.broadcast %27 : vector<1x128xf32> to vector<8x128xf32>
    %29 = arith.addf %26, %28 : vector<8x128xf32>
    %cst_20 = arith.constant 0.000000e+00 : f32
    %30 = vector.broadcast %cst_20 : f32 to vector<8x128xf32>
    %31 = arith.maximumf %29, %30 : vector<8x128xf32>
    %c0_21 = arith.constant 0 : index
    %c0_22 = arith.constant 0 : index
    %32 = vector.load %arg8[%c0_21, %c0_22] : memref<128x1xf32, #tpu.memory_space<vmem>>, vector<128x1xf32>
    %cst_23 = arith.constant dense<0.000000e+00> : vector<8x1xf32>
    %33 = tpu.matmul %31, %32, %cst_23 {dimension_numbers = #tpu.dot_dimension_numbers<[1], [0], [0], [1], [0, 0, 1, 1], [], []>} : vector<8x128xf32>, vector<128x1xf32>, vector<8x1xf32> -> vector<8x1xf32>
    %c0_24 = arith.constant 0 : index
    %c0_25 = arith.constant 0 : index
    %34 = vector.load %arg9[%c0_24, %c0_25] : memref<1x1xf32, #tpu.memory_space<vmem>>, vector<1x1xf32>
    %35 = vector.broadcast %34 : vector<1x1xf32> to vector<8x1xf32>
    %36 = arith.addf %33, %35 : vector<8x1xf32>
    %c0_26 = arith.constant 0 : index
    %c0_27 = arith.constant 0 : index
    %37 = vector.load %arg10[%c0_26, %c0_27] : memref<8x1xf32, #tpu.memory_space<vmem>>, vector<8x1xf32>
    tpu.vector_store %arg10[%c0_26, %c0_27], %36 {strides = array<i32>} : memref<8x1xf32, #tpu.memory_space<vmem>>, vector<8x1xf32>,
    return
  }
  func.func @transform_0(%arg0: i32) -> (i32, i32) {
    %c0_i32 = arith.constant 0 : i32
    %c0_i32_0 = arith.constant 0 : i32
    return %arg0, %c0_i32 : i32, i32
  }
  func.func @transform_1(%arg0: i32) -> (i32, i32) {
    %c0_i32 = arith.constant 0 : i32
    %c0_i32_0 = arith.constant 0 : i32
    %c0_i32_1 = arith.constant 0 : i32
    return %c0_i32, %c0_i32_0 : i32, i32
  }
  func.func @transform_2(%arg0: i32) -> (i32, i32) {
    %c0_i32 = arith.constant 0 : i32
    %c0_i32_0 = arith.constant 0 : i32
    %c0_i32_1 = arith.constant 0 : i32
    return %c0_i32, %c0_i32_0 : i32, i32
  }
  func.func @transform_3(%arg0: i32) -> (i32, i32) {
    %c0_i32 = arith.constant 0 : i32
    %c0_i32_0 = arith.constant 0 : i32
    %c0_i32_1 = arith.constant 0 : i32
    return %c0_i32, %c0_i32_0 : i32, i32
  }
  func.func @transform_4(%arg0: i32) -> (i32, i32) {
    %c0_i32 = arith.constant 0 : i32
    %c0_i32_0 = arith.constant 0 : i32
    %c0_i32_1 = arith.constant 0 : i32
    return %c0_i32, %c0_i32_0 : i32, i32
  }
  func.func @transform_5(%arg0: i32) -> (i32, i32) {
    %c0_i32 = arith.constant 0 : i32
    %c0_i32_0 = arith.constant 0 : i32
    %c0_i32_1 = arith.constant 0 : i32
    return %c0_i32, %c0_i32_0 : i32, i32
  }
  func.func @transform_6(%arg0: i32) -> (i32, i32) {
    %c0_i32 = arith.constant 0 : i32
    %c0_i32_0 = arith.constant 0 : i32
    %c0_i32_1 = arith.constant 0 : i32
    return %c0_i32, %c0_i32_0 : i32, i32
  }
  func.func @transform_7(%arg0: i32) -> (i32, i32) {
    %c0_i32 = arith.constant 0 : i32
    %c0_i32_0 = arith.constant 0 : i32
    %c0_i32_1 = arith.constant 0 : i32
    return %c0_i32, %c0_i32_0 : i32, i32
  }
  func.func @transform_8(%arg0: i32) -> (i32, i32) {
    %c0_i32 = arith.constant 0 : i32
    %c0_i32_0 = arith.constant 0 : i32
    %c0_i32_1 = arith.constant 0 : i32
    return %c0_i32, %c0_i32_0 : i32, i32
  }
  func.func @transform_9(%arg0: i32) -> (i32, i32) {
    %c0_i32 = arith.constant 0 : i32
    %c0_i32_0 = arith.constant 0 : i32
    return %arg0, %c0_i32 : i32, i32
  }
}

</mosaic_0001>

<bundles_post_ra>
// kernel: tpu_custom_call.1
= control target key start
LH: loop header
LB: loop body
LE: loop exit
PB: predicated region body
PF: predicated region fallthrough
CT: control target
= control target key end

     0   :  { %s510_s0 = inlined_call_operand.hbm [shape: f32[8,8], index: 0, kind: input, shape index: {}]   ;;  %s511_s1 = inlined_call_operand.hbm [shape: f32[8,128], index: 1, kind: input, shape index: {}]   ;;  %s512_s2 = inlined_call_operand.vmem [shape: f32[1,128], index: 2, kind: input, shape index: {}]   ;;  %s513_s3 = inlined_call_operand.vmem [shape: f32[128,128], index: 3, kind: input, shape index: {}]   ;;  %s514_s4 = inlined_call_operand.vmem [shape: f32[1,128], index: 4, kind: input, shape index: {}]   ;;  %s515_s5 = inlined_call_operand.hbm [shape: f32[128,128], index: 5, kind: input, shape index: {}]   ;;  %s516_s6 = inlined_call_operand.vmem [shape: f32[1,128], index: 6, kind: input, shape index: {}]   ;;  %s517_s7 = inlined_call_operand.vmem [shape: f32[128,1], index: 7, kind: input, shape index: {}]   ;;  %s518_s8 = inlined_call_operand.<no memory space> [shape: f32[1,1], index: 8, kind: input, shape index: {}]   ;;  %s519_s9 = inlined_call_operand.vmem [shape: f32[8,1], index: 9, kind: output, shape index: {}]  }
   0x1   :  { %v14_v0 = vstv %s518_s8 }
   0x2   :  { %15 = vst [vmem:[#allocation2] sm:$0x1] %v14_v0 }
   0x3   :  { %16 = vsyncpa [#allocation4], 0 }
   0x4   :  { %17 = vsyncpa [#allocation6], 0  ;;  %s34_s13 = sshll.u32 %s511_s1, 4  ;;  %s335_s14 = smov [#allocation5]   ;;  %s35_s13 = int_to_ptr.hbm [resolvable:$true] %s34_s13 }
   0x5   :  { %s36_s15 = sshll.u32 %s335_s14, 4  ;;  %s23_s18 = sshll.u32 %s510_s0, 4  ;;  %s37_s15 = int_to_ptr.vmem [resolvable:$true] %s36_s15  ;;  %s24_s18 = int_to_ptr.hbm [resolvable:$true] %s23_s18 }
   0x6   :  { %39 = dma.hbm_to_vmem [thread:$0]  %s35_s13, 128, %s37_s15, [#allocation6]  }
   0x7   :  { %s336_s19 = smov [#allocation3]   ;;  %s50_s22 = sshll.u32 %s515_s5, 4  ;;  %s51_s22 = int_to_ptr.hbm [resolvable:$true] %s50_s22 }
   0x8   :  { %s25_s20 = sshll.u32 %s336_s19, 4  ;;  %s337_s1 = smov [#allocation7]   ;;  %s26_s20 = int_to_ptr.vmem [resolvable:$true] %s25_s20 }
   0x9   :  { %28 = dma.hbm_to_vmem [thread:$0]  %s24_s18, 128, %s26_s20, [#allocation4]  }
   0xa   :  { %s52_s23 = sshll.u32 %s337_s1, 4  ;;  %s338_s24 = smov 128   ;;  %s53_s23 = int_to_ptr.vmem [resolvable:$true] %s52_s23 }
   0xb   :  { %s339_s25 = smov 8  }
   0xc   :  { %58 = dma.hbm_to_vmem [thread:$0]  %s51_s22, 2048, %s53_s23, [#allocation6], %s338_s24, %s338_s24, %s339_s25  }
   0xd   :  { %331 = dma.done.wait [#allocation4], 128  }
   0xe   :  { %332 = vsyncadd [#allocation4], 4294967168 }
   0xf   :  { %333 = dma.done.wait [#allocation6], 2176  }
  0x10   :  { %334 = vsyncadd [#allocation6], 4294965120  ;;  %vm79_vm0 = vcmask 64512   ;;  %v83_v1 = vld [vmem:[#allocation5] sm:$0xff]  ;;  %v77_v2 = vld [vmem:[#allocation3] sm:$0xff]  ;;  %vm239_vm1 = vcmask 7168  }
  0x11   :  { %v132_v3 = vld [vmem:[%s513_s3 + $0x78] sm:$0xff]  ;;  %102 = vmatpush.msra.mxu0 %v83_v1  ;;  %v78_v4 = vmul.f32 %v77_v2, %v77_v2  ;;  %v131_v5 = vld [vmem:[%s513_s3 + $0x70] sm:$0xff]  ;;  %v130_v6 = vld [vmem:[%s513_s3 + $0x68] sm:$0xff] }
  0x12   :  { %137 = vmatpush.msra.mxu1 %v132_v3  ;;  %247 = vmatmul.msk.f32.vlgmr.msra.gmra.mxu0 %vm79_vm0, %v77_v2  ;;  %v129_v8 = vld [vmem:[%s513_s3 + $0x60] sm:$0xff]  ;;  %v128_v9 = vld [vmem:[%s513_s3 + $0x58] sm:$0xff]  ;;  %v127_v10 = vld [vmem:[%s513_s3 + $0x50] sm:$0xff] }
  0x13   :  { %v80_v7 = vsel %vm79_vm0, %v78_v4, 0.0  ;;  %v126_v11 = vld [vmem:[%s513_s3 + $0x48] sm:$0xff]  ;;  %v125_v12 = vld [vmem:[%s513_s3 + $0x40] sm:$0xff]  ;;  %v124_v13 = vld [vmem:[%s513_s3 + $0x38] sm:$0xff] }
  0x14   :  { %138 = vmatpush.msra.mxu1 %v131_v5  ;;  %81 = vadd.xlane.f32.xlu0 %v80_v7  ;;  %v123_v14 = vld [vmem:[%s513_s3 + $0x30] sm:$0xff]  ;;  %v122_v15 = vld [vmem:[%s513_s3 + $0x28] sm:$0xff]  ;;  %v121_v16 = vld [vmem:[%s513_s3 + $0x20] sm:$0xff] }
  0x15   :  { %v120_v17 = vld [vmem:[%s513_s3 + $0x18] sm:$0xff]  ;;  %v119_v18 = vld [vmem:[%s513_s3 + $0x10] sm:$0xff]  ;;  %v118_v19 = vld [vmem:[%s513_s3 + $0x8] sm:$0xff] }
  0x16   :  { %139 = vmatpush.msra.mxu1 %v130_v6  ;;  %v117_v20 = vld [vmem:[%s513_s3] sm:$0xff]  ;;  %v173_v21 = vld [vmem:[#allocation7 + $0x78] sm:$0xff]  ;;  %v170_v24 = vld [vmem:[#allocation7 + $0x60] sm:$0xff] }
  0x17   :  { %v172_v22 = vld [vmem:[#allocation7 + $0x70] sm:$0xff]  ;;  %178 = vmatpush.msra.mxu2 %v173_v21  ;;  %v171_v23 = vld [vmem:[#allocation7 + $0x68] sm:$0xff]  ;;  %v169_v25 = vld [vmem:[#allocation7 + $0x58] sm:$0xff] }
  0x18   :  { %140 = vmatpush.msra.mxu1 %v129_v8  ;;  %v168_v26 = vld [vmem:[#allocation7 + $0x50] sm:$0xff]  ;;  %v253_v27 = vld [vmem:[%s512_s2] ss:$0 sm:$0xff]  ;;  %v166_v30 = vld [vmem:[#allocation7 + $0x40] sm:$0xff] }
  0x19   :  { %179 = vmatpush.msra.mxu2 %v172_v22  ;;  %v167_v29 = vld [vmem:[#allocation7 + $0x48] sm:$0xff]  ;;  %v165_v32 = vld [vmem:[#allocation7 + $0x38] sm:$0xff]  ;;  %v164_v34 = vld [vmem:[#allocation7 + $0x30] sm:$0xff] }
  0x1a   :  { %141 = vmatpush.msra.mxu1 %v128_v9  ;;  %v163_v36 = vld [vmem:[#allocation7 + $0x28] sm:$0xff]  ;;  %v162_v38 = vld [vmem:[#allocation7 + $0x20] sm:$0xff]  ;;  %v161_v40 = vld [vmem:[#allocation7 + $0x18] sm:$0xff] }
  0x1b   :  { %180 = vmatpush.msra.mxu2 %v171_v23  ;;  %v160_v43 = vld [vmem:[#allocation7 + $0x10] sm:$0xff]  ;;  %v159_v44 = vld [vmem:[#allocation7 + $0x8] sm:$0xff]  ;;  %v158_v45 = vld [vmem:[#allocation7] sm:$0xff] }
  0x1c   :  { %142 = vmatpush.msra.mxu1 %v127_v10  ;;  %v214_v46 = vld [vmem:[%s517_s7 + $0x78] sm:$0xff]  ;;  %v213_v47 = vld [vmem:[%s517_s7 + $0x70] sm:$0xff]  ;;  %v212_v48 = vld [vmem:[%s517_s7 + $0x68] sm:$0xff] }
  0x1d   :  { %181 = vmatpush.msra.mxu2 %v170_v24  ;;  %219 = vmatpush.msra.mxu3 %v214_v46  ;;  %v211_v49 = vld [vmem:[%s517_s7 + $0x60] sm:$0xff]  ;;  %v210_v50 = vld [vmem:[%s517_s7 + $0x58] sm:$0xff]  ;;  %v209_v51 = vld [vmem:[%s517_s7 + $0x50] sm:$0xff] }
  0x1e   :  { %143 = vmatpush.msra.mxu1 %v126_v11  ;;  %v208_v52 = vld [vmem:[%s517_s7 + $0x48] sm:$0xff]  ;;  %v207_v53 = vld [vmem:[%s517_s7 + $0x40] sm:$0xff]  ;;  %v206_v54 = vld [vmem:[%s517_s7 + $0x38] sm:$0xff] }
  0x1f   :  { %182 = vmatpush.msra.mxu2 %v169_v25  ;;  %220 = vmatpush.msra.mxu3 %v213_v47  ;;  %v205_v55 = vld [vmem:[%s517_s7 + $0x30] sm:$0xff]  ;;  %v204_v56 = vld [vmem:[%s517_s7 + $0x28] sm:$0xff]  ;;  %v203_v57 = vld [vmem:[%s517_s7 + $0x20] sm:$0xff] }
  0x20   :  { %144 = vmatpush.msra.mxu1 %v125_v12  ;;  %v202_v58 = vld [vmem:[%s517_s7 + $0x18] sm:$0xff]  ;;  %v254_v59 = vld [vmem:[%s514_s4] ss:$0 sm:$0xff]  ;;  %v201_v63 = vld [vmem:[%s517_s7 + $0x10] sm:$0xff] }
  0x21   :  { %183 = vmatpush.msra.mxu2 %v168_v26  ;;  %221 = vmatpush.msra.mxu3 %v212_v48  ;;  %v200_v0 = vld [vmem:[%s517_s7 + $0x8] sm:$0xff]  ;;  %v199_v1 = vld [vmem:[%s517_s7] sm:$0xff] }
  0x22   :  { %145 = vmatpush.msra.mxu1 %v124_v13  ;;  %v255_v2 = vld [vmem:[%s516_s6] ss:$0 sm:$0xff] }
  0x23   :  { %184 = vmatpush.msra.mxu2 %v167_v29  ;;  %222 = vmatpush.msra.mxu3 %v211_v49  ;;  %v256_v6 = vld [vmem:[#allocation2] ss:$0 sm:$0xff] }
  0x24   :  { %146 = vmatpush.msra.mxu1 %v123_v14 }
  0x25   :  { %185 = vmatpush.msra.mxu2 %v166_v30  ;;  %223 = vmatpush.msra.mxu3 %v210_v50 }
  0x26   :  { %147 = vmatpush.msra.mxu1 %v122_v15 }
  0x27   :  { %186 = vmatpush.msra.mxu2 %v165_v32  ;;  %224 = vmatpush.msra.mxu3 %v209_v51 }
  0x28   :  { %148 = vmatpush.msra.mxu1 %v121_v16 }
  0x29   :  { %187 = vmatpush.msra.mxu2 %v164_v34  ;;  %225 = vmatpush.msra.mxu3 %v208_v52 }
  0x2a   :  { %149 = vmatpush.msra.mxu1 %v120_v17 }
  0x2b   :  { %188 = vmatpush.msra.mxu2 %v163_v36  ;;  %226 = vmatpush.msra.mxu3 %v207_v53 }
  0x2c   :  { %150 = vmatpush.msra.mxu1 %v119_v18 }
  0x2d   :  { %189 = vmatpush.msra.mxu2 %v162_v38  ;;  %227 = vmatpush.msra.mxu3 %v206_v54 }
  0x2e   :  { %151 = vmatpush.msra.mxu1 %v118_v19 }
  0x2f   :  { %190 = vmatpush.msra.mxu2 %v161_v40  ;;  %228 = vmatpush.msra.mxu3 %v205_v55 }
  0x30   :  { %152 = vmatpush.msra.mxu1 %v117_v20 }
  0x31   :  { %191 = vmatpush.msra.mxu2 %v160_v43  ;;  %229 = vmatpush.msra.mxu3 %v204_v56 }
  0x33   :  { %192 = vmatpush.msra.mxu2 %v159_v44  ;;  %230 = vmatpush.msra.mxu3 %v203_v57 }
  0x35   :  { %193 = vmatpush.msra.mxu2 %v158_v45  ;;  %231 = vmatpush.msra.mxu3 %v202_v58 }
  0x37   :  { %232 = vmatpush.msra.mxu3 %v201_v63 }
  0x39   :  { %233 = vmatpush.msra.mxu3 %v200_v0 }
  0x3b   :  { %234 = vmatpush.msra.mxu3 %v199_v1 }
  0x87   :  { %v82_v28 = vpop.xlane.xlu0 %81 }
  0x88   :  { %v111_v31 = vadd.f32 %v253_v27, %v82_v28 }
  0x8f   :  { %v104_v33 = vpop.f32.mrf.mxu0 }
  0x90   :  { %v112_v35 = vsub.f32 %v111_v31, %v104_v33 }
  0x92   :  { %v113_v37 = vmax.f32 %v112_v35, 0.0 }
  0x94   :  { %v114_v39 = vsub.f32 0.0, %v113_v37 }
  0x96   :  { %v115_v41 = vmul.f32 1.442695, %v114_v39 }
  0x98   :  { %257 = vpow2.f32 %v115_v41 }
  0x9e   :  { %v258_v42 = vpop.eup %257 }
  0x9f   :  { %153 = vmatmul.f32.vlgmr.msra.gmra.mxu1 %v258_v42 }
 0x11c   :  { %v154_v60 = vpop.f32.mrf.mxu1 }
 0x11d   :  { %v155_v61 = vadd.f32 %v254_v59, %v154_v60 }
 0x11f   :  { %v157_v62 = vmax.f32 %v155_v61, 0.0 }
 0x121   :  { %194 = vmatmul.f32.vlgmr.msra.gmra.mxu2 %v157_v62 }
 0x1a4   :  { %v195_v3 = vpop.f32.mrf.mxu2 }
 0x1a5   :  { %v196_v4 = vadd.f32 %v255_v2, %v195_v3 }
 0x1a7   :  { %v198_v5 = vmax.f32 %v196_v4, 0.0 }
 0x1a9   :  { %235 = vmatmul.f32.vlgmr.msra.gmra.mxu3 %v198_v5 }
 0x22c   :  { %v236_v7 = vpop.f32.mrf.mxu3 }
 0x22d   :  { %v237_v8 = vadd.f32 %v256_v6, %v236_v7 }
 0x22f   :  { %240 = vst.msk [vmem:[%s519_s9] sm:$0xff] %vm239_vm1, %v237_v8 }
 0x230   :  { %245 = vsyncpa [#allocation4], 1 }
 0x231   :  { %246 = vsyncpa [#allocation6], 1 }

</bundles_post_ra>
